<compile_context>
chip_gen: v5e
topology: v5e:2x2
jax: 0.10.0
libtpu: 0.0.40
codegen_flags: <defaults>
</compile_context>

<pallas_src>
import math

import jax
import jax.numpy as jnp
from jax.experimental import pallas as pl
from jax.experimental.pallas import tpu as pltpu


# ----------------------------------------------------------------------------
# Kernels
# ----------------------------------------------------------------------------
def _fourier_cf_kernel(xyz_ref, gbw_ref, bias_ref, out_ref):
    """Channels-first (lane-dense) block: one (batch, n-tile) grid step.

    xyz_ref : (d_in, TN)  points of this tile, transposed (native dtype)
    gbw_ref : (NC, d_in)  folded projection, sin/cos fused (f32)
    bias_ref: (NC, 1)     folded bias; second half carries the +pi/2 (f32)
    out_ref : (NC, TN)    sin(proj_wide) == [sin(p) ; cos(p)]
    """
    xyz = xyz_ref[...].astype(jnp.float32)                        # (d_in, TN)
    proj = jnp.dot(gbw_ref[...], xyz,
                   preferred_element_type=jnp.float32)            # (NC, TN)
    out_ref[...] = jnp.sin(proj + bias_ref[...]).astype(out_ref.dtype)


def _fourier_cl_kernel(xyz_ref, gbw_ref, bias_ref, out_ref):
    """Channels-last block; only used when num_channels >= 128 (already
    lane-dense in the channel axis).

    xyz_ref : (TN, d_in)   gbw_ref : (d_in, NC)   bias_ref: (1, NC)
    out_ref : (TN, NC)
    """
    xyz = xyz_ref[...].astype(jnp.float32)
    proj = jnp.dot(xyz, gbw_ref[...],
                   preferred_element_type=jnp.float32)            # (TN, NC)
    out_ref[...] = jnp.sin(proj + bias_ref[...]).astype(out_ref.dtype)


# ----------------------------------------------------------------------------
# Tile selection
# ----------------------------------------------------------------------------
def _pick_tile_n(n, align, tile_n, min_steps=4):
    """Biggest `align`-aligned tile <= tile_n that still leaves ~min_steps
    pipeline steps along N (so the output writeback overlaps compute and both
    v7x TensorCores are fed even when B == 1).  Falls back to the full extent
    when N <= align (full-dim blocks are always legal)."""
    if n <= align:
        return n
    by_steps = (n // min_steps) // align * align
    tn = min(tile_n, n)
    tn = min(tn, max(align, by_steps))
    return max(align, (tn // align) * align)


# ----------------------------------------------------------------------------
# Wrapper
# ----------------------------------------------------------------------------
def position_embedding_coords_sine(xyz, gauss_B, *, num_channels=None,
                                   input_range=None, normalize=False,
                                   channels_first=False,
                                   out_dtype=jnp.float32, tile_n=2048):
    """JAX/Pallas equivalent of PositionEmbeddingCoordsSine.forward_single for
    pos_type in {'fourier', 'periodic'} (they differ only in gauss_B init).

    xyz          : (B, N, d_in) or (N, d_in) float array
    gauss_B      : (d_in, d_pos // 2) projection matrix
    input_range  : ((B, d_in) min, (B, d_in) max); required iff normalize
    normalize    : False / True / 'max' (shift_scale_points normalize_mode)
    channels_first=False -> (B, N, num_channels)   (matches the PyTorch module)
    channels_first=True  -> (B, num_channels, N)   (lane-dense, no transpose)
    out_dtype    : float32 (default) or bfloat16 (halves HBM write traffic)

    Note: like the PyTorch code there is no epsilon -> rmax == rmin on an axis
    gives inf/NaN.  get_fourier_embeddings hardcodes the 2*pi scale, so the
    module's `scale` attribute (used only by the 'sine' type) is ignored here.
    """
    squeeze_batch = xyz.ndim == 2
    if squeeze_batch:
        xyz = xyz[None]
    B, N, d_in = xyz.shape

    if num_channels is None:
        num_channels = gauss_B.shape[1] * 2
    assert num_channels > 0 and num_channels % 2 == 0
    d_out = num_channels // 2
    assert d_out <= gauss_B.shape[1]
    assert d_in == gauss_B.shape[0]

    gb = gauss_B[:, :d_out].astype(jnp.float32)                  # (d_in, d_out)
    two_pi = jnp.float32(2.0 * math.pi)

    if normalize:
        if input_range is None:
            raise ValueError("input_range should be passed if normalize is True")
        rmin = jnp.broadcast_to(
            jnp.asarray(input_range[0], jnp.float32).reshape(-1, d_in), (B, d_in))
        rmax = jnp.broadcast_to(
            jnp.asarray(input_range[1], jnp.float32).reshape(-1, d_in), (B, d_in))
        diff = rmax - rmin
        if normalize == "max":        # shift_scale_points normalize_mode='max'
            diff = jnp.broadcast_to(jnp.max(diff, axis=-1, keepdims=True),
                                    diff.shape)
        scale = two_pi / diff                                    # (B, d_in)
        offset = -rmin * scale                                   # (B, d_in)
    else:
        scale = jnp.full((B, d_in), two_pi, jnp.float32)
        offset = jnp.zeros((B, d_in), jnp.float32)

    # Fold normalize + 2*pi into the projection (tiny per-batch math), then
    # fuse sin/cos:   [sin(p) | cos(p)] == sin(x @ gb_wide + bias_wide).
    gb_eff = scale[:, :, None] * gb[None, :, :]                  # (B, d_in, d_out)
    bias_eff = jnp.einsum("bd,dk->bk", offset, gb)               # (B, d_out)
    gb_wide = jnp.concatenate([gb_eff, gb_eff], axis=-1)         # (B, d_in, NC)
    bias_wide = jnp.concatenate(
        [bias_eff, bias_eff + jnp.float32(0.5 * math.pi)], axis=-1)  # (B, NC)

    cparams = pltpu.CompilerParams(dimension_semantics=("parallel", "parallel"))

    use_cf_compute = channels_first or num_channels < 128

    if use_cf_compute:
        # Lane-dense orientation: N on the 128-lane axis.
        tn = _pick_tile_n(N, 128, tile_n)
        grid = (B, pl.cdiv(N, tn))
        xyz_t = jnp.transpose(xyz, (0, 2, 1))                    # (B, d_in, N)
        gbw_t = jnp.transpose(gb_wide, (0, 2, 1))                # (B, NC, d_in)
        bias = bias_wide[:, :, None]                             # (B, NC, 1)
        out = pl.pallas_call(
            _fourier_cf_kernel,
            out_shape=jax.ShapeDtypeStruct((B, num_channels, N), out_dtype),
            grid_spec=pltpu.PrefetchScalarGridSpec(
                num_scalar_prefetch=0,
                grid=grid,
                in_specs=[
                    pl.BlockSpec((None, d_in, tn), lambda b, n: (b, 0, n)),
                    pl.BlockSpec((None, num_channels, d_in),
                                 lambda b, n: (b, 0, 0)),
                    pl.BlockSpec((None, num_channels, 1),
                                 lambda b, n: (b, 0, 0)),
                ],
                out_specs=pl.BlockSpec((None, num_channels, tn),
                                       lambda b, n: (b, 0, n)),
            ),
            compiler_params=cparams,
        )(xyz_t, gbw_t, bias)
        if not channels_first:
            # Small XLA transpose back to the PyTorch (B, N, NC) layout; cheap
            # relative to the lane-dense compute it buys when NC < 128.
            out = jnp.transpose(out, (0, 2, 1))
    else:
        # num_channels >= 128 and channels_last requested: the channel axis is
        # already lane-dense, store directly in the PyTorch layout.
        tn = _pick_tile_n(N, 32, tile_n)
        grid = (B, pl.cdiv(N, tn))
        bias = bias_wide[:, None, :]                             # (B, 1, NC)
        out = pl.pallas_call(
            _fourier_cl_kernel,
            out_shape=jax.ShapeDtypeStruct((B, N, num_channels), out_dtype),
            grid_spec=pltpu.PrefetchScalarGridSpec(
                num_scalar_prefetch=0,
                grid=grid,
                in_specs=[
                    pl.BlockSpec((None, tn, d_in), lambda b, n: (b, n, 0)),
                    pl.BlockSpec((None, d_in, num_channels),
                                 lambda b, n: (b, 0, 0)),
                    pl.BlockSpec((None, 1, num_channels),
                                 lambda b, n: (b, 0, 0)),
                ],
                out_specs=pl.BlockSpec((None, tn, num_channels),
                                       lambda b, n: (b, n, 0)),
            ),
            compiler_params=cparams,
        )(xyz, gb_wide, bias)

    # TODO(synk): add_normalized_positions=True (overwrite the first 3 output
    # channels with the normalized coords) is not wired in; default is False.
    return out[0] if squeeze_batch else out


# ----------------------------------------------------------------------------
# Self-test
# ----------------------------------------------------------------------------
if __name__ == "__main__":
    # Module hyper-params (fourier branch of __init__)
    d_in = 3
    d_pos = 32          # must be even
    gauss_scale = 1.0
    normalize = True

    # Small problem shapes
    B, N = 2, 256
    num_channels = d_pos

    key = jax.random.PRNGKey(0)
    k_xyz, k_B, k_xyz2, k_B2 = jax.random.split(key, 4)

    # Deterministic "parameter": gauss_B ~ N(0,1) * gauss_scale
    gauss_B = jax.random.normal(k_B, (d_in, d_pos // 2), jnp.float32) * gauss_scale

    # Deterministic point cloud in an arbitrary box + its per-batch bounds
    xyz = jax.random.uniform(k_xyz, (B, N, d_in), jnp.float32,
                             minval=-2.0, maxval=3.0)
    rmin = jnp.min(xyz, axis=1)   # (B, 3)
    rmax = jnp.max(xyz, axis=1)   # (B, 3)

    # Plain-JAX reference mirroring the PyTorch math.
    xyz_n = (xyz - rmin[:, None, :]) / (rmax - rmin)[:, None, :]
    proj = jnp.einsum("bnd,dk->bnk", xyz_n * (2.0 * math.pi),
                      gauss_B[:, :num_channels // 2])
    ref = jnp.concatenate([jnp.sin(proj), jnp.cos(proj)], axis=-1)

    # 1) Default layout: (B, N, num_channels), same as the PyTorch module
    #    (computed channels-first internally, transposed back by XLA).
    out = position_embedding_coords_sine(
        xyz, gauss_B, num_channels=num_channels,
        input_range=(rmin, rmax), normalize=normalize)
    out = jax.block_until_ready(out)
    assert out.shape == (B, N, num_channels), out.shape
    assert jnp.allclose(out, ref, atol=1e-3, rtol=1e-3), (
        float(jnp.max(jnp.abs(out - ref))))

    # 2) Lane-dense fast path: (B, num_channels, N).
    out_cf = position_embedding_coords_sine(
        xyz, gauss_B, num_channels=num_channels,
        input_range=(rmin, rmax), normalize=normalize, channels_first=True)
    out_cf = jax.block_until_ready(out_cf)
    assert out_cf.shape == (B, num_channels, N), out_cf.shape
    ref_cf = jnp.transpose(ref, (0, 2, 1))
    assert jnp.allclose(out_cf, ref_cf, atol=1e-3, rtol=1e-3), (
        float(jnp.max(jnp.abs(out_cf - ref_cf))))

    # 3) normalize=False branch (no input_range needed).
    out_nn = position_embedding_coords_sine(
        xyz, gauss_B, num_channels=num_channels)
    out_nn = jax.block_until_ready(out_nn)
    proj_nn = jnp.einsum("bnd,dk->bnk", xyz * (2.0 * math.pi),
                         gauss_B[:, :num_channels // 2])
    ref_nn = jnp.concatenate([jnp.sin(proj_nn), jnp.cos(proj_nn)], axis=-1)
    assert jnp.allclose(out_nn, ref_nn, atol=1e-3, rtol=1e-3), (
        float(jnp.max(jnp.abs(out_nn - ref_nn))))

    # 4) num_channels >= 128 exercises the channels-last kernel path.
    d_pos2 = 128
    gauss_B2 = jax.random.normal(k_B2, (d_in, d_pos2 // 2), jnp.float32)
    B2, N2 = 1, 160
    xyz2 = jax.random.uniform(k_xyz2, (B2, N2, d_in), jnp.float32,
                              minval=0.0, maxval=1.0)
    out2 = position_embedding_coords_sine(xyz2, gauss_B2, num_channels=d_pos2)
    out2 = jax.block_until_ready(out2)
    proj2 = jnp.einsum("bnd,dk->bnk", xyz2 * (2.0 * math.pi), gauss_B2)
    ref2 = jnp.concatenate([jnp.sin(proj2), jnp.cos(proj2)], axis=-1)
    assert out2.shape == (B2, N2, d_pos2), out2.shape
    assert jnp.allclose(out2, ref2, atol=1e-3, rtol=1e-3), (
        float(jnp.max(jnp.abs(out2 - ref2))))

    print("KERNEL_OK")
</pallas_src>

<mosaic_0001>
module attributes {stable_mosaic.version = 11 : i64} {
  func.func @_fourier_cf_kernel(%arg0: i32, %arg1: i32, %arg2: memref<1x3x128xf32, #tpu.memory_space<vmem>>, %arg3: memref<1x32x3xf32, #tpu.memory_space<vmem>>, %arg4: memref<1x32x1xf32, #tpu.memory_space<vmem>>, %arg5: memref<1x32x128xf32, #tpu.memory_space<vmem>>) attributes {dimension_semantics = [#tpu.dimension_semantics<parallel>, #tpu.dimension_semantics<parallel>], iteration_bounds = array<i64: 2, 2>, scalar_prefetch = 0 : i64, scratch_operands = 0 : i64, tpu.core_type = #tpu.core_type<tc>, window_params = [{transform_indices = @transform_0, window_bounds = array<i64: 1, 3, 128>}, {transform_indices = @transform_1, window_bounds = array<i64: 1, 32, 3>}, {transform_indices = @transform_2, window_bounds = array<i64: 1, 32, 1>}, {transform_indices = @transform_3, window_bounds = array<i64: 1, 32, 128>}]} {
    %c0 = arith.constant 0 : index
    %c0_0 = arith.constant 0 : index
    %c0_1 = arith.constant 0 : index
    %0 = vector.load %arg2[%c0, %c0_0, %c0_1] : memref<1x3x128xf32, #tpu.memory_space<vmem>>, vector<1x3x128xf32>
    %1 = vector.shape_cast %0 : vector<1x3x128xf32> to vector<3x128xf32>
    %c0_2 = arith.constant 0 : index
    %c0_3 = arith.constant 0 : index
    %c0_4 = arith.constant 0 : index
    %2 = vector.load %arg3[%c0_2, %c0_3, %c0_4] : memref<1x32x3xf32, #tpu.memory_space<vmem>>, vector<1x32x3xf32>
    %3 = vector.shape_cast %2 : vector<1x32x3xf32> to vector<32x3xf32>
    %cst = arith.constant dense<0.000000e+00> : vector<32x128xf32>
    %4 = tpu.matmul %3, %1, %cst {dimension_numbers = #tpu.dot_dimension_numbers<[1], [0], [0], [1], [0, 0, 1, 1], [], []>} : vector<32x3xf32>, vector<3x128xf32>, vector<32x128xf32> -> vector<32x128xf32>
    %c0_5 = arith.constant 0 : index
    %c0_6 = arith.constant 0 : index
    %c0_7 = arith.constant 0 : index
    %5 = vector.load %arg4[%c0_5, %c0_6, %c0_7] : memref<1x32x1xf32, #tpu.memory_space<vmem>>, vector<1x32x1xf32>
    %6 = vector.shape_cast %5 : vector<1x32x1xf32> to vector<32x1xf32>
    %7 = vector.broadcast %6 : vector<32x1xf32> to vector<32x128xf32>
    %8 = arith.addf %4, %7 : vector<32x128xf32>
    %9 = math.sin %8 : vector<32x128xf32>
    %c0_8 = arith.constant 0 : index
    %c0_9 = arith.constant 0 : index
    %c0_10 = arith.constant 0 : index
    %10 = vector.load %arg5[%c0_8, %c0_9, %c0_10] : memref<1x32x128xf32, #tpu.memory_space<vmem>>, vector<1x32x128xf32>
    %11 = vector.shape_cast %10 : vector<1x32x128xf32> to vector<32x128xf32>
    %12 = vector.shape_cast %9 : vector<32x128xf32> to vector<1x32x128xf32>
    tpu.vector_store %arg5[%c0_8, %c0_9, %c0_10], %12 {strides = array<i32>} : memref<1x32x128xf32, #tpu.memory_space<vmem>>, vector<1x32x128xf32>,
    return
  }
  func.func @transform_0(%arg0: i32, %arg1: i32) -> (i32, i32, i32) {
    %c0_i32 = arith.constant 0 : i32
    %c0_i32_0 = arith.constant 0 : i32
    return %arg0, %c0_i32, %arg1 : i32, i32, i32
  }
  func.func @transform_1(%arg0: i32, %arg1: i32) -> (i32, i32, i32) {
    %c0_i32 = arith.constant 0 : i32
    %c0_i32_0 = arith.constant 0 : i32
    %c0_i32_1 = arith.constant 0 : i32
    return %arg0, %c0_i32, %c0_i32_0 : i32, i32, i32
  }
  func.func @transform_2(%arg0: i32, %arg1: i32) -> (i32, i32, i32) {
    %c0_i32 = arith.constant 0 : i32
    %c0_i32_0 = arith.constant 0 : i32
    %c0_i32_1 = arith.constant 0 : i32
    return %arg0, %c0_i32, %c0_i32_0 : i32, i32, i32
  }
  func.func @transform_3(%arg0: i32, %arg1: i32) -> (i32, i32, i32) {
    %c0_i32 = arith.constant 0 : i32
    %c0_i32_0 = arith.constant 0 : i32
    return %arg0, %c0_i32, %arg1 : i32, i32, i32
  }
}

</mosaic_0001>

<bundles_post_ra>
// kernel: tpu_custom_call.1
= control target key start
LH: loop header
LB: loop body
LE: loop exit
PB: predicated region body
PF: predicated region fallthrough
CT: control target
= control target key end

     0   :  { %8 = vsyncpa [#allocation3], 0  ;;  %s1881_s0 = inlined_call_operand.vmem [shape: f32[2,3,256], index: 0, kind: input, shape index: {}]   ;;  %s1882_s1 = inlined_call_operand.vmem [shape: f32[2,32,3], index: 1, kind: input, shape index: {}]   ;;  %s1883_s2 = inlined_call_operand.vmem [shape: f32[2,32,1], index: 2, kind: input, shape index: {}]   ;;  %s1884_s3 = inlined_call_operand.hbm [shape: f32[2,32,256], index: 3, kind: output, shape index: {}]  }
   0x1   :  { %10 = vsyncpa [#allocation3 + $0x1], 0  ;;  %s1303_s12 = smov 0   ;;  %s1305_s13 = smov 0  }
   0x2   :  { %s1307_s14 = smov 0   ;;  %s1309_s15 = smov 0  }
   0x3   :  { %s1311_s16 = smov 0   ;;  %s1313_s17 = smov 0  }
   0x4   :  { %s1315_s18 = smov 0   ;;  %s1317_s19 = smov 0  }
   0x5 LB: > { %s1055_s20 = sadd.s32 4294967295, %s1271_s19   ;;  %s1056_s21 = sadd.s32 4294967294, %s1271_s19   ;;  %s1271_s19 = sphi %s1317_s19, %s16_s19   ;;  %s1267_s18 = sphi %s1315_s18, %s1904_s18   ;;  %s1263_s17 = sphi %s1313_s17, %s1903_s17   ;;  %s1259_s16 = sphi %s1311_s16, %s1902_s16   ;;  %s1255_s15 = sphi %s1309_s15, %s1901_s15   ;;  %s1251_s14 = sphi %s1307_s14, %s1900_s14   ;;  %s1247_s13 = sphi %s1305_s13, %s1899_s13   ;;  %s1243_s12 = sphi %s1303_s12, %s1898_s12  }
   0x6   : > { %s25_s22 = sadd.s32 1, %s1263_s17  ;;  %s28_s23 = sadd.s32 1, %s1267_s18 }
   0x7   : > { %p26_p0 = scmp.ge.s32.totalorder %s25_s22, 2  ;;  %p127_p1 = scmp.ne.s32.totalorder %s1251_s14, %s1247_s13 }
   0x8   : > { %p128_p2 = scmp.eq.s32.totalorder %s1055_s20, 3  ;;  %p133_p5 = scmp.ne.s32.totalorder %s1247_s13, %s1243_s12 }
   0x9   : > { %s1906_s22 = smov (%p26_p0, %s25_s22), 0  ;;  %s1908_s23 = smov (!%p26_p0, %s28_s23), %s1267_s18 }
   0xa   : > { %s113_s24 = ssub.s32 %s1263_s17, %s1906_s22  ;;  %p1354_p3 = por %p128_p2, %p127_p1 }
   0xb   : > { %p30_p4 = scmp.ge.s32.totalorder %s1908_s23, 2  ;;  %p134_p6 = scmp.eq.s32.totalorder %s1056_s21, 3 }
   0xc   : > { %p1059_p7 = scmp.ge.s32.totalorder %s1271_s19, 1  ;;  %p179_p9 = scmp.lt.s32.totalorder %s1271_s19, 5 }
   0xd   : > { %s1910_s23 = smov (%p30_p4, %s1908_s23), 0  ;;  %p1363_p8 = por %p134_p6, %p133_p5 }
   0xe   : > { %1887 = sst [smem:[#allocation5_spill]] %s1910_s23  ;;  %s112_s27 = ssub.s32 %s1267_s18, %s1910_s23 }
   0xf   : > { %s117_s28 = sadd.s32 1, %s1251_s14  ;;  %s114_s29 = sor.u32 %s113_s24, %s112_s27 }
  0x10   : > { %p180_p10 = pnand %p1059_p7, %p179_p9  ;;  %p115_p11 = scmp.eq.s32.totalorder %s114_s29, 0 }
  0x11   : > { %p216_p12 = scmp.lt.s32.totalorder (!%p180_p10), %s1259_s16, 1  ;;  %p218_p13 = scmp.lt.s32.totalorder (!%p180_p10), %s1255_s15, 1 }
  0x12   : > { %s1372_s30 = scalar_select %p115_p11, %s1251_s14, %s117_s28  }
  0x13   : > { %183 = sbr.rel (%p180_p10) target bundleno = 357 (0x165), region = 32  ;;  %s1197_s29 = scalar_lea.hbm (!%p180_p10), %s1884_s3, 128 }
  0x18   : > { %v1273_v0 = vmov 0   ;;  %s217_s4 = scalar_select %p216_p12, %s1259_s16, 1  ;;  %vm276_vm0 = vcmask 1042432   ;;  %vm263_vm1 = vcmask 23552   ;;  %v1274_v44 = vmov 683565275  }
  0x19   : > { %1176 = vset.pattern.permute.xlu1 %v1273_v0  ;;  %1175 = vset.pattern.permute.xlu0 %v1273_v0  ;;  %s219_s5 = scalar_select %p218_p13, %s1255_s15, 1  ;;  %v1275_v46 = vmov 2475754826   ;;  %v1276_v50 = vmov 2131351028  }
  0x1a   : > { %s1061_s6 = sshll.u32 %s217_s4, 1  ;;  %s1089_s7 = sshll.u32 %s217_s4, 5  ;;  %v1277_v53 = vmov 2102212464   ;;  %v1278_v56 = vmov 920167782  }
  0x1b   : > { %s221_s8 = sadd.s32 %s1061_s6, %s219_s5  ;;  %s228_s11 = scalar_lea.vmem %s1882_s1, %s1089_s7  ;;  %v1279_v59 = vmov 1326507024  }
  0x1c   : > { %s1062_s20 = sshll.u32 %s221_s8, 2  ;;  %s233_s27 = scalar_lea.vmem %s1883_s2, %s1089_s7  ;;  %v235_v4 = vld [vmem:[%s228_s11] sm:$0xff]  ;;  %v236_v5 = vld [vmem:[%s228_s11 + $0x8] sm:$0xff]  ;;  %v237_v6 = vld [vmem:[%s228_s11 + $0x10] sm:$0xff] }
  0x1d   : > { %s223_s23 = scalar_lea.vmem %s1881_s0, %s1062_s20  ;;  %v241_v1 = vld [vmem:[%s233_s27 + $0x10] sm:$0xff]  ;;  %v239_v2 = vld [vmem:[%s233_s27] sm:$0xff]  ;;  %v238_v7 = vld [vmem:[%s228_s11 + $0x18] sm:$0xff]  ;;  %s1085_s6 = sshll.u32 %s1259_s16, 3 }
  0x1e   : > { %v234_v3 = vld [vmem:[%s223_s23] sm:$0x7]  ;;  %255 = vperm.xlu1 %1176, %v241_v1   ;;  %245 = vperm.xlu0 %1175, %v239_v2   ;;  %v242_v8 = vld [vmem:[%s233_s27 + $0x18] sm:$0xff]  ;;  %v240_v9 = vld [vmem:[%s233_s27 + $0x8] sm:$0xff]  ;;  %s213_s23 = sand.u32 1, %s1247_s13   ;;  %s944_s7 = sadd.s32 %s1255_s15, %s1085_s6 }
  0x1f   : > { %1067 = vmatpush.msk.msra.mxu0 %vm276_vm0, %v234_v3  ;;  %1091 = vmatpush.msk.msra.mxu1 %vm276_vm0, %v234_v3  ;;  %s1060_s4 = sshll.u32 %s213_s23, 5  ;;  %s1086_s8 = sshll.u32 %s944_s7, 3 }
  0x20   : > { %1092 = vmatpush.msk.msra.mxu2 %vm276_vm0, %v234_v3  ;;  %1093 = vmatpush.msk.msra.mxu3 %vm276_vm0, %v234_v3  ;;  %s1707_s5 = scalar_lea.vmem [#allocation2], %s1060_s4  ;;  %s946_s16 = scalar_lea.hbm %s1884_s3, %s1086_s8 }
  0x21   : > { %1068 = vmatmul.msk.f32.vlgmr.msra.gmra.mxu0 %vm263_vm1, %v235_v4  ;;  %1069 = vmatmul.msk.f32.vlgmr.msra.gmra.mxu1 %vm263_vm1, %v236_v5  ;;  %s947_s11 = sshll.u32 %s1707_s5, 4  ;;  %s949_s20 = sshll.u32 %s946_s16, 4  ;;  %s1836_s11 = int_to_ptr.vmem [resolvable:$true] %s947_s11  ;;  %s950_s20 = int_to_ptr.hbm [resolvable:$true] %s949_s20 }
  0x22   : > { %1070 = vmatmul.msk.f32.vlgmr.msra.gmra.mxu2 %vm263_vm1, %v237_v6  ;;  %1071 = vmatmul.msk.f32.vlgmr.msra.gmra.mxu3 %vm263_vm1, %v238_v7  ;;  %s934_s15 = scalar_lea.sflag [#allocation3], %s213_s23  ;;  %s1191_s21 = sshra.s32 %s950_s20, 4  ;;  %s1192_s21 = int_to_ptr.hbm [resolvable:$true] %s1191_s21 }
  0x23   : > { %s1193_s24 = scalar_lea.hbm %s1192_s21, 32  ;;  %p1198_p4 = scmp.lt.s32.totalorder %s1192_s21, %s1884_s3 }
  0x24   : > { %p1194_p0 = scmp.ne.s32.totalorder %s1192_s21, %s1193_s24  ;;  %p1199_p5 = scmp.lt.s32.totalorder %s1197_s29, %s1193_s24 }
  0x26   : > { %260 = vperm.xlu1 %1176, %v242_v8   ;;  %250 = vperm.xlu0 %1175, %v240_v9   ;;  %p1195_p1 = pnand %p1194_p0, %p1354_p3  ;;  %p1200_p6 = por %p1199_p5, %p1198_p4 }
  0x28   : > { %p1196_p2 = pneg %p1195_p1 }
  0x2a   : > { %p1201_p7 = pnand %p1200_p6, %p1196_p2 }
  0x90   : > { %v246_v10 = vpop.permute.xlu0 %245  ;;  %v256_v30 = vpop.permute.xlu1 %255 }
  0x98   : > { %v251_v11 = vpop.permute.xlu0 %250 }
  0x9e   : > { %v297_v12 = vpop.f32.mrf.mxu0  ;;  %v300_v13 = vpop.f32.mrf.mxu1 }
  0x9f   : > { %v1393_v14 = vadd.f32 %v297_v12, %v246_v10  ;;  %v1395_v15 = vadd.f32 %v300_v13, %v251_v11 }
  0xa1   : > { %v309_v16 = vand.u32 2147483647, %v1393_v14  ;;  %v312_v17 = vand.u32 2139095040, %v1393_v14  ;;  %v464_v18 = vand.u32 2147483647, %v1395_v15  ;;  %v467_v19 = vand.u32 2139095040, %v1395_v15 }
  0xa3   : > { %v313_v20 = vshrl.u32 %v312_v17, 23  ;;  %v316_v21 = vand.u32 8388607, %v309_v16  ;;  %v468_v22 = vshrl.u32 %v467_v19, 23  ;;  %v471_v23 = vand.u32 8388607, %v464_v18 }
  0xa5   : > { %v1072_v24 = vadd.s32 4294967169, %v313_v20  ;;  %v317_v25 = vor.u32 8388608, %v316_v21  ;;  %v1075_v26 = vadd.s32 4294967169, %v468_v22  ;;  %v472_v27 = vor.u32 8388608, %v471_v23  ;;  %v303_v28 = vpop.f32.mrf.mxu2 }
  0xa6   : > { %v1407_v33 = vadd.f32 %v303_v28, %v256_v30 }
  0xa7   : > { %v319_v29 = vadd.s32 1, %v1072_v24  ;;  %v1405_v31 = vshll.u32 %v317_v25, 8  ;;  %v474_v32 = vadd.s32 1, %v1075_v26  ;;  %v1409_v35 = vshll.u32 %v472_v27, 8 }
  0xa8   : > { %v622_v42 = vand.u32 2139095040, %v1407_v33 }
  0xa9   : > { %vm320_vm2 = vcmp.gt.s32.totalorder %v319_v29, 0  ;;  %vm475_vm3 = vcmp.gt.s32.totalorder %v474_v32, 0  ;;  %v1412_v38 = vand.u32 65535, %v1405_v31  ;;  %v1415_v40 = vshrl.u32 %v1405_v31, 16 }
  0xaa   : > { %v321_v34 = vsel %vm320_vm2, %v319_v29, 0  ;;  %v476_v37 = vsel %vm475_vm3, %v474_v32, 0  ;;  %v1425_v48 = vand.u32 65535, %v1409_v35 }
  0xab   : > { %v323_v36 = vand.u32 31, %v321_v34  ;;  %v1417_v41 = vand.u32 31, %v476_v37  ;;  %v1420_v43 = vshrl.u32 %v321_v34, 5  ;;  %v1467_v28 = vshrl.u32 %v476_v37, 5 }
  0xad   : > { %v324_v39 = vsub.s32 32, %v323_v36  ;;  %v326_v45 = vshll.u32 %v1274_v44, %v323_v36  ;;  %v329_v47 = vshll.u32 %v1275_v46, %v323_v36  ;;  %v332_v52 = vshll.u32 %v1276_v50, %v323_v36 }
  0xae   : > { %v335_v55 = vshll.u32 %v1277_v53, %v323_v36  ;;  %v338_v58 = vshll.u32 %v1278_v56, %v323_v36  ;;  %v1436_v1 = vsub.s32 32, %v1417_v41  ;;  %vm341_vm4 = vcmp.lt.s32.totalorder %v1420_v43, 1 }
  0xaf   : > { %v327_v49 = vshrl.u32 %v1275_v46, %v324_v39  ;;  %v330_v51 = vshrl.u32 %v1276_v50, %v324_v39  ;;  %v333_v54 = vshrl.u32 %v1277_v53, %v324_v39  ;;  %v336_v57 = vshrl.u32 %v1278_v56, %v324_v39 }
  0xb0   : > { %v339_v60 = vshrl.u32 %v1279_v59, %v324_v39  ;;  %vm342_vm5 = vcmp.lt.s32.totalorder %v1420_v43, 2  ;;  %v325_v4 = vshrl.u32 %v1274_v44, %v324_v39  ;;  %vm344_vm6 = vcmp.lt.s32.totalorder %v1420_v43, 4 }
  0xb1   : > { %v328_v61 = vor.u32 %v327_v49, %v326_v45  ;;  %v331_v62 = vor.u32 %v330_v51, %v329_v47  ;;  %v334_v63 = vor.u32 %v333_v54, %v332_v52  ;;  %v337_v2 = vor.u32 %v336_v57, %v335_v55 }
  0xb2   : > { %v340_v3 = vor.u32 %v339_v60, %v338_v58  ;;  %vm343_vm7 = vcmp.lt.s32.totalorder %v1420_v43, 3  ;;  %v481_v9 = vshll.u32 %v1274_v44, %v1417_v41  ;;  %v482_v13 = vshrl.u32 %v1275_v46, %v1436_v1 }
  0xb3   : > { %v349_v5 = vsel %vm341_vm4, %v328_v61, %v331_v62  ;;  %v353_v6 = vsel %vm341_vm4, %v331_v62, %v334_v63  ;;  %v350_v7 = vsel %vm344_vm6, %v337_v2, 920167782  ;;  %v346_v10 = vsel %vm344_vm6, %v334_v63, 2102212464 }
  0xb4   : > { %v354_v8 = vsel %vm344_vm6, %v340_v3, 1326507024  ;;  %v351_v11 = vsel %vm343_vm7, %v334_v63, %v350_v7  ;;  %v484_v20 = vshll.u32 %v1275_v46, %v1417_v41  ;;  %v485_v21 = vshrl.u32 %v1276_v50, %v1436_v1 }
  0xb5   : > { %v355_v12 = vsel %vm343_vm7, %v337_v2, %v354_v8  ;;  %v352_v17 = vsel %vm342_vm5, %v349_v5, %v351_v11  ;;  %v345_v26 = vsel %vm341_vm4, %v325_v4, %v328_v61  ;;  %v347_v27 = vsel %vm343_vm7, %v331_v62, %v346_v10 }
  0xb6   : > { %v356_v19 = vsel %vm342_vm5, %v353_v6, %v355_v12  ;;  %v382_v24 = vand.u32 65535, %v352_v17  ;;  %v383_v25 = vshrl.u32 %v352_v17, 16  ;;  %v1469_v29 = vor.u32 %v482_v13, %v481_v9 }
  0xb7   : > { %v360_v22 = vand.u32 65535, %v356_v19  ;;  %v361_v23 = vshrl.u32 %v356_v19, 16  ;;  %v1473_v34 = vor.u32 %v485_v21, %v484_v20  ;;  %v488_v36 = vshrl.u32 %v1277_v53, %v1436_v1 }
  0xb8   : > { %v385_v45 = vmul.u32 %v383_v25, %v1412_v38  ;;  %v386_v47 = vmul.u32 %v382_v24, %v1415_v40  ;;  %v487_v37 = vshll.u32 %v1276_v50, %v1417_v41  ;;  %v384_v52 = vmul.u32 %v382_v24, %v1412_v38 }
  0xb9   : > { %v363_v30 = vmul.u32 %v361_v23, %v1412_v38  ;;  %v364_v32 = vmul.u32 %v360_v22, %v1415_v40  ;;  %v362_v39 = vmul.u32 %v360_v22, %v1412_v38  ;;  %v365_v49 = vmul.u32 %v361_v23, %v1415_v40 }
  0xba   : > { %v387_v54 = vmul.u32 %v383_v25, %v1415_v40  ;;  %v388_v60 = vshll.u32 %v385_v45, 16  ;;  %v390_v62 = vshll.u32 %v386_v47, 16  ;;  %v489_v63 = vor.u32 %v488_v36, %v487_v37 }
  0xbb   : > { %v366_v51 = vshll.u32 %v363_v30, 16  ;;  %v367_v55 = vshrl.u32 %v363_v30, 16  ;;  %v368_v57 = vshll.u32 %v364_v32, 16  ;;  %v369_v58 = vshrl.u32 %v364_v32, 16 }
  0xbc   : > { %vm392_vm9 = vc.u32 %v384_v52, %v388_v60  ;;  %v394_v3 = vadd.s32 %v388_v60, %v384_v52  ;;  %v491_v4 = vshrl.u32 %v1278_v56, %v1436_v1  ;;  %v490_v40 = vshll.u32 %v1277_v53, %v1417_v41 }
  0xbd   : > { %vm370_vm8 = vc.u32 %v362_v39, %v366_v51  ;;  %v372_v61 = vadd.s32 %v366_v51, %v362_v39  ;;  %v393_v38 = vsel %vm392_vm9, 1, %v1273_v0  ;;  %v493_v8 = vshll.u32 %v1278_v56, %v1417_v41 }
  0xbe   : > { %v371_v2 = vsel %vm370_vm8, 1, %v1273_v0  ;;  %v395_v7 = vadd.s32 %v393_v38, %v387_v54  ;;  %vm396_vm11 = vc.u32 %v394_v3, %v390_v62  ;;  %v492_v11 = vor.u32 %v491_v4, %v490_v40 }
  0xbf   : > { %v373_v5 = vadd.s32 %v371_v2, %v365_v49  ;;  %vm374_vm10 = vc.u32 %v372_v61, %v368_v57  ;;  %v397_v10 = vsel %vm396_vm11, 1, %v1273_v0  ;;  %v494_v12 = vshrl.u32 %v1279_v59, %v1436_v1 }
  0xc0   : > { %v375_v6 = vsel %vm374_vm10, 1, %v1273_v0  ;;  %v389_v13 = vshrl.u32 %v385_v45, 16  ;;  %v391_v17 = vshrl.u32 %v386_v47, 16  ;;  %v1497_v19 = vadd.s32 %v394_v3, %v390_v62 }
  0xc1   : > { %v377_v9 = vadd.s32 %v375_v6, %v373_v5  ;;  %v399_v20 = vadd.s32 %v397_v10, %v395_v7  ;;  %v495_v22 = vor.u32 %v494_v12, %v493_v8  ;;  %vm496_vm12 = vcmp.lt.s32.totalorder %v1467_v28, 1 }
  0xc2   : > { %vm499_vm13 = vcmp.lt.s32.totalorder %v1467_v28, 4  ;;  %vm498_vm14 = vcmp.lt.s32.totalorder %v1467_v28, 3  ;;  %v504_v41 = vsel %vm496_vm12, %v1469_v29, %v1473_v34  ;;  %vm497_vm15 = vcmp.lt.s32.totalorder %v1467_v28, 2 }
  0xc3   : > { %v378_v21 = vadd.s32 %v377_v9, %v367_v55  ;;  %v400_v23 = vadd.s32 %v399_v20, %v389_v13  ;;  %v505_v24 = vsel %vm499_vm13, %v492_v11, 920167782  ;;  %v508_v32 = vsel %vm496_vm12, %v1473_v34, %v489_v63 }
  0xc4   : > { %v506_v30 = vsel %vm498_vm14, %v489_v63, %v505_v24  ;;  %v348_v36 = vsel %vm342_vm5, %v345_v26, %v347_v27  ;;  %v509_v47 = vsel %vm499_vm13, %v495_v22, 1326507024  ;;  %v514_v49 = vshrl.u32 %v1409_v35, 16 }
  0xc5   : > { %v1508_v25 = vadd.s32 %v378_v21, %v369_v58  ;;  %v401_v39 = vadd.s32 %v400_v23, %v391_v17  ;;  %v507_v45 = vsel %vm497_vm15, %v504_v41, %v506_v30  ;;  %v510_v37 = vsel %vm498_vm14, %v492_v11, %v509_v47 }
  0xc6   : > { %v537_v51 = vand.u32 65535, %v507_v45  ;;  %v511_v43 = vsel %vm497_vm15, %v508_v32, %v510_v37  ;;  %v538_v26 = vshrl.u32 %v507_v45, 16  ;;  %v623_v27 = vshrl.u32 %v622_v42, 23 }
  0xc7   : > { %vm404_vm0 = vc.u32 %v1508_v25, %v1497_v19  ;;  %v405_v52 = vadd.s32 1, %v401_v39  ;;  %v402_v54 = vmul.u32 %v1405_v31, %v348_v36  ;;  %v515_v55 = vand.u32 65535, %v511_v43 }
  0xc8   : > { %v516_v57 = vshrl.u32 %v511_v43, 16  ;;  %v480_v60 = vshrl.u32 %v1274_v44, %v1436_v1  ;;  %v540_v61 = vmul.u32 %v538_v26, %v1425_v48  ;;  %v541_v62 = vmul.u32 %v537_v51, %v514_v49 }
  0xc9   : > { %v406_v58 = vsel %vm404_vm0, %v405_v52, %v401_v39  ;;  %v501_v3 = vsel %vm499_vm13, %v489_v63, 2102212464  ;;  %v519_v5 = vmul.u32 %v515_v55, %v514_v49  ;;  %v539_v42 = vmul.u32 %v537_v51, %v1425_v48 }
  0xca   : > { %v407_v2 = vadd.s32 %v406_v58, %v402_v54  ;;  %v518_v4 = vmul.u32 %v516_v57, %v1425_v48  ;;  %v542_v38 = vmul.u32 %v538_v26, %v514_v49  ;;  %v543_v31 = vshll.u32 %v540_v61, 16 }
  0xcb   : > { %v1078_v40 = vadd.s32 4294967169, %v623_v27  ;;  %v517_v7 = vmul.u32 %v515_v55, %v1425_v48  ;;  %v520_v8 = vmul.u32 %v516_v57, %v514_v49  ;;  %v523_v9 = vshll.u32 %v519_v5, 16 }
  0xcc   : > { %v408_v6 = vadd.s32 536870912, %v407_v2  ;;  %v521_v1 = vshll.u32 %v518_v4, 16  ;;  %v545_v10 = vshll.u32 %v541_v62, 16  ;;  %vm547_vm1 = vc.u32 %v539_v42, %v543_v31 }
  0xcd   : > { %v549_v11 = vadd.s32 %v543_v31, %v539_v42  ;;  %v548_v13 = vsel %vm547_vm1, 1, %v1273_v0  ;;  %v619_v21 = vand.u32 2147483647, %v1407_v33  ;;  %v500_v48 = vsel %vm496_vm12, %v480_v60, %v1469_v29 }
  0xce   : > { %v409_v12 = vshrl.u32 %v408_v6, 30  ;;  %vm525_vm2 = vc.u32 %v517_v7, %v521_v1  ;;  %v527_v63 = vadd.s32 %v521_v1, %v517_v7  ;;  %v550_v20 = vadd.s32 %v548_v13, %v542_v38 }
  0xcf   : > { %v526_v17 = vsel %vm525_vm2, 1, %v1273_v0  ;;  %vm551_vm3 = vc.u32 %v549_v11, %v545_v10  ;;  %v502_v41 = vsel %vm498_vm14, %v1473_v34, %v501_v3  ;;  %v629_v32 = vadd.s32 1, %v1078_v40 }
  0xd0   : > { %v410_v22 = vshll.u32 %v409_v12, 30  ;;  %v528_v23 = vadd.s32 %v526_v17, %v520_v8  ;;  %vm529_vm4 = vc.u32 %v527_v63, %v523_v9  ;;  %v552_v30 = vsel %vm551_vm3, 1, %v1273_v0 }
  0xd1   : > { %v530_v24 = vsel %vm529_vm4, 1, %v1273_v0  ;;  %v522_v39 = vshrl.u32 %v518_v4, 16  ;;  %v554_v47 = vadd.s32 %v552_v30, %v550_v20  ;;  %vm311_vm5 = vcmp.lt.s32.totalorder %v1393_v14, 0 }
  0xd2   : > { %v411_v36 = vsub.s32 %v407_v2, %v410_v22  ;;  %v532_v45 = vadd.s32 %v530_v24, %v528_v23  ;;  %v433_v37 = vsub.s32 4, %v409_v12  ;;  %v544_v49 = vshrl.u32 %v540_v61, 16 }
  0xd3   : > { %vm630_vm6 = vcmp.gt.s32.totalorder %v629_v32, 0  ;;  %v524_v51 = vshrl.u32 %v519_v5, 16  ;;  %v503_v34 = vsel %vm497_vm15, %v500_v48, %v502_v41  ;;  %v546_v43 = vshrl.u32 %v541_v62, 16 }
  0xd4   : > { %vm412_vm7 = vcmp.lt.s32.totalorder %v411_v36, 0  ;;  %v413_v29 = vsub.s32 0, %v411_v36  ;;  %v533_v52 = vadd.s32 %v532_v45, %v522_v39  ;;  %v555_v26 = vadd.s32 %v554_v47, %v544_v49 }
  0xd5   : > { %v631_v27 = vsel %vm630_vm6, %v629_v32, 0  ;;  %v1556_v57 = vadd.s32 %v549_v11, %v545_v10  ;;  %v626_v58 = vand.u32 8388607, %v619_v21  ;;  %v434_v61 = vsel %vm311_vm5, %v433_v37, %v409_v12 }
  0xd6   : > { %v414_v54 = vsel %vm412_vm7, %v413_v29, %v411_v36  ;;  %v1554_v55 = vadd.s32 %v533_v52, %v524_v51  ;;  %v556_v2 = vadd.s32 %v555_v26, %v546_v43  ;;  %v633_v3 = vand.u32 31, %v631_v27 }
  0xd7   : > { %v415_v60 = vclz %v414_v54  ;;  %vm1564_vm8 = vcmp.le.f32.partialorder %v309_v16, 0.7853982  ;;  %v403_v62 = vadd.s32 %v1497_v19, %v1508_v25  ;;  %v557_v4 = vmul.u32 %v1409_v35, %v503_v34 }
  0xd8   : > { %vm559_vm9 = vc.u32 %v1554_v55, %v1556_v57  ;;  %v560_v42 = vadd.s32 1, %v556_v2  ;;  %v634_v38 = vsub.s32 32, %v633_v3  ;;  %v436_v31 = vsel %vm1564_vm8, 0, %v434_v61 }
  0xd9   : > { %v1073_v5 = vadd.s32 4294967294, %v415_v60  ;;  %v627_v40 = vor.u32 8388608, %v626_v58  ;;  %v1575_v6 = vshrl.u32 %v631_v27, 5  ;;  %v636_v16 = vshll.u32 %v1274_v44, %v633_v3 }
  0xda   : > { %v561_v7 = vsel %vm559_vm9, %v560_v42, %v556_v2  ;;  %v637_v19 = vshrl.u32 %v1275_v46, %v634_v38  ;;  %v639_v35 = vshll.u32 %v1275_v46, %v633_v3  ;;  %v640_v1 = vshrl.u32 %v1276_v50, %v634_v38 }
  0xdb   : > { %vm1074_vm10 = vcmp.lt.s32.totalorder %v1073_v5, 0  ;;  %v562_v8 = vadd.s32 %v561_v7, %v557_v4  ;;  %v642_v9 = vshll.u32 %v1276_v50, %v633_v3  ;;  %v643_v12 = vshrl.u32 %v1277_v53, %v634_v38 }
  0xdc   : > { %v418_v25 = vsel %vm1074_vm10, 0, %v1073_v5  ;;  %v645_v63 = vshll.u32 %v1277_v53, %v633_v3  ;;  %v638_v20 = vor.u32 %v637_v19, %v636_v16  ;;  %v646_v22 = vshrl.u32 %v1278_v56, %v634_v38 }
  0xdd   : > { %v419_v10 = vsub.s32 32, %v418_v25  ;;  %v423_v11 = vsub.s32 4294967266, %v418_v25  ;;  %v420_v13 = vshll.u32 %v411_v36, %v418_v25  ;;  %v563_v17 = vadd.s32 536870912, %v562_v8 }
  0xde   : > { %v1585_v41 = vor.u32 %v640_v1, %v639_v35  ;;  %v649_v24 = vshrl.u32 %v1279_v59, %v634_v38  ;;  %v647_v32 = vor.u32 %v646_v22, %v645_v63  ;;  %v1590_v39 = vshll.u32 %v627_v40, 8  ;;  %v261_v35 = vpop.permute.xlu1 %260 }
  0xdf   : > { %v421_v48 = vshrl.u32 %v403_v62, %v419_v10  ;;  %v424_v23 = vadd.s32 127, %v423_v11  ;;  %v1588_v30 = vshrl.u32 %v563_v17, 30  ;;  %v644_v37 = vor.u32 %v643_v12, %v642_v9 }
  0xe0   : > { %v648_v36 = vshll.u32 %v1278_v56, %v633_v3  ;;  %v453_v49 = vadd.s32 3, %v436_v31  ;;  %vm651_vm11 = vcmp.lt.s32.totalorder %v1575_v6, 1  ;;  %vm654_vm12 = vcmp.lt.s32.totalorder %v1575_v6, 4  ;;  %v306_v31 = vpop.f32.mrf.mxu3 }
  0xe1   : > { %v422_v45 = vor.u32 %v421_v48, %v420_v13  ;;  %v425_v47 = vshll.u32 %v424_v23, 23  ;;  %v565_v29 = vshll.u32 %v1588_v30, 30  ;;  %v659_v34 = vsel %vm651_vm11, %v638_v20, %v1585_v41 }
  0xe2   : > { %v650_v52 = vor.u32 %v649_v24, %v648_v36  ;;  %vm653_vm13 = vcmp.lt.s32.totalorder %v1575_v6, 3  ;;  %v660_v26 = vsel %vm654_vm12, %v647_v32, 920167782  ;;  %v668_v27 = vand.u32 65535, %v1590_v39 }
  0xe3   : > { %v426_v51 = vor.u32 4788187, %v425_v47  ;;  %v1599_v43 = vsub.s32 %v562_v8, %v565_v29  ;;  %v429_v58 = vcvt.s32.f32 %v422_v45  ;;  %vm652_vm14 = vcmp.lt.s32.totalorder %v1575_v6, 2 }
  0xe4   : > { %v661_v60 = vsel %vm653_vm13, %v644_v37, %v660_v26  ;;  %v669_v3 = vshrl.u32 %v1590_v39, 16  ;;  %v1613_v4 = vand.u32 3, %v453_v49  ;;  %v663_v5 = vsel %vm651_vm11, %v1585_v41, %v644_v37 }
  0xe5   : > { %v427_v54 = vand.u32 2147483647, %v426_v51  ;;  %vm567_vm15 = vcmp.lt.s32.totalorder %v1599_v43, 0  ;;  %v568_v61 = vsub.s32 0, %v1599_v43  ;;  %v662_v2 = vsel %vm652_vm14, %v659_v34, %v661_v60 }
  0xe6   : > { %v664_v42 = vsel %vm654_vm12, %v650_v52, 1326507024  ;;  %v635_v16 = vshrl.u32 %v1274_v44, %v634_v38  ;;  %v692_v19 = vand.u32 65535, %v662_v2  ;;  %v693_v9 = vshrl.u32 %v662_v2, 16 }
  0xe7   : > { %v430_v62 = vmul.f32 %v429_v58, %v427_v54  ;;  %v569_v40 = vsel %vm567_vm15, %v568_v61, %v1599_v43  ;;  %v665_v7 = vsel %vm653_vm13, %v647_v32, %v664_v42  ;;  %v558_v10 = vadd.s32 %v1556_v57, %v1554_v55 }
  0xe8   : > { %v570_v8 = vclz %v569_v40  ;;  %v666_v1 = vsel %vm652_vm14, %v663_v5, %v665_v7  ;;  %v588_v11 = vsub.s32 4, %v1588_v30  ;;  %v1629_v63 = vadd.f32 %v306_v31, %v261_v35 }
  0xe9   : > { %v431_v25 = vxor.u32 2147483648, %v430_v62  ;;  %v670_v12 = vand.u32 65535, %v666_v1  ;;  %v1635_v17 = vsel %vm651_vm11, %v635_v16, %v638_v20  ;;  %v671_v22 = vshrl.u32 %v666_v1, 16 }
  0xea   : > { %v1076_v13 = vadd.s32 4294967294, %v570_v8  ;;  %v1644_v55 = vsel %vm654_vm12, %v644_v37, 2102212464  ;;  %v694_v23 = vmul.u32 %v692_v19, %v668_v27  ;;  %v1648_v45 = vmul.u32 %v693_v9, %v668_v27 }
  0xeb   : > { %v432_v38 = vsel %vm311_vm5, %v431_v25, %v430_v62  ;;  %v674_v57 = vmul.u32 %v670_v12, %v669_v3  ;;  %v673_v32 = vmul.u32 %v671_v22, %v668_v27  ;;  %v672_v47 = vmul.u32 %v670_v12, %v668_v27 }
  0xec   : > { %v1640_v48 = vsel %vm1564_vm8, %v1393_v14, %v432_v38  ;;  %vm1077_vm0 = vcmp.lt.s32.totalorder %v1076_v13, 0  ;;  %v675_v36 = vmul.u32 %v671_v22, %v669_v3  ;;  %v1650_v49 = vmul.u32 %v692_v19, %v669_v3 }
  0xed   : > { %v437_v24 = vmul.f32 %v1640_v48, %v1640_v48  ;;  %v573_v20 = vsel %vm1077_vm0, 0, %v1076_v13  ;;  %v678_v52 = vshll.u32 %v674_v57, 16  ;;  %vm466_vm1 = vcmp.lt.s32.totalorder %v1395_v15, 0 }
  0xee   : > { %v574_v51 = vsub.s32 32, %v573_v20  ;;  %v578_v37 = vsub.s32 4294967266, %v573_v20  ;;  %v676_v34 = vshll.u32 %v673_v32, 16  ;;  %v679_v26 = vshrl.u32 %v674_v57, 16 }
  0xef   : > { %v438_v28 = vmul.f32 -0.001358992, %v437_v24  ;;  %v445_v29 = vmul.f32 -0.00019511016, %v437_v24  ;;  %v697_v54 = vmul.u32 %v693_v9, %v669_v3  ;;  %v575_v61 = vshll.u32 %v1599_v43, %v573_v20 }
  0xf0   : > { %v576_v2 = vshrl.u32 %v558_v10, %v574_v51  ;;  %v579_v62 = vadd.s32 127, %v578_v37  ;;  %vm680_vm2 = vc.u32 %v672_v47, %v676_v34  ;;  %v682_v27 = vadd.s32 %v676_v34, %v672_v47 }
  0xf1   : > { %v439_v58 = vadd.f32 0.041655596, %v438_v28  ;;  %v446_v60 = vadd.f32 0.008332121, %v445_v29  ;;  %v698_v5 = vshll.u32 %v1648_v45, 16  ;;  %v681_v16 = vsel %vm680_vm2, 1, %v1273_v0 }
  0xf2   : > { %v577_v40 = vor.u32 %v576_v2, %v575_v61  ;;  %vm1658_vm3 = vcmp.le.f32.partialorder %v464_v18, 0.7853982  ;;  %v580_v3 = vshll.u32 %v579_v62, 23  ;;  %v677_v19 = vshrl.u32 %v673_v32, 16 }
  0xf3   : > { %v440_v42 = vmul.f32 %v439_v58, %v437_v24  ;;  %v447_v31 = vmul.f32 %v446_v60, %v437_v24  ;;  %v683_v43 = vadd.s32 %v681_v16, %v675_v36  ;;  %vm684_vm4 = vc.u32 %v682_v27, %v678_v52 }
  0xf4   : > { %v685_v8 = vsel %vm684_vm4, 1, %v1273_v0  ;;  %v700_v1 = vshll.u32 %v1650_v49, 16  ;;  %vm456_vm5 = vcmp.eq.s32.totalorder %v1613_v4, 0  ;;  %v581_v9 = vor.u32 4788187, %v580_v3 }
  0xf5   : > { %v441_v35 = vadd.f32 -0.4999988, %v440_v42  ;;  %v448_v25 = vadd.f32 -0.16666654, %v447_v31  ;;  %v687_v10 = vadd.s32 %v685_v8, %v683_v43  ;;  %vm702_vm6 = vc.u32 %v694_v23, %v698_v5 }
  0xf6   : > { %v704_v18 = vadd.s32 %v698_v5, %v694_v23  ;;  %vm455_vm7 = vcmp.lt.s32.totalorder %v1613_v4, 2  ;;  %v584_v13 = vcvt.s32.f32 %v577_v40  ;;  %v703_v22 = vsel %vm702_vm6, 1, %v1273_v0 }
  0xf7   : > { %v442_v12 = vmul.f32 %v441_v35, %v437_v24  ;;  %v449_v38 = vmul.f32 %v448_v25, %v437_v24  ;;  %v582_v57 = vand.u32 2147483647, %v581_v9  ;;  %v688_v32 = vadd.s32 %v687_v10, %v677_v19 }
  0xf8   : > { %v705_v20 = vadd.s32 %v703_v22, %v697_v54  ;;  %vm706_vm8 = vc.u32 %v704_v18, %v700_v1  ;;  %v589_v23 = vsel %vm466_vm1, %v588_v11, %v1588_v30  ;;  %v699_v51 = vshrl.u32 %v1648_v45, 16 }
  0xf9   : > { %v443_v47 = vadd.f32 1.0, %v442_v12  ;;  %v450_v36 = vadd.f32 1.0, %v449_v38  ;;  %v707_v24 = vsel %vm706_vm8, 1, %v1273_v0  ;;  %v585_v28 = vmul.f32 %v584_v13, %v582_v57 }
  0xfa   : > { %v1674_v29 = vadd.s32 %v688_v32, %v679_v26  ;;  %v709_v52 = vadd.s32 %v707_v24, %v705_v20  ;;  %v657_v54 = vsel %vm653_vm13, %v1585_v41, %v1644_v55  ;;  %v777_v58 = vand.u32 2139095040, %v1629_v63 }
  0xfb   : > { %v451_v37 = vmul.f32 %v450_v36, %v1640_v48  ;;  %v460_v34 = vxor.u32 2147483648, %v443_v47  ;;  %v586_v30 = vxor.u32 2147483648, %v585_v28  ;;  %v701_v11 = vshrl.u32 %v1650_v49, 16 }
  0xfc   : > { %v1686_v26 = vadd.s32 %v704_v18, %v700_v1  ;;  %v710_v60 = vadd.s32 %v709_v52, %v699_v51  ;;  %vm459_vm9 = vcmp.eq.s32.totalorder %v1613_v4, 2  ;;  %v591_v48 = vsel %vm1658_vm3, 0, %v589_v23 }
  0xfd   : > { %v457_v45 = vxor.u32 2147483648, %v451_v37  ;;  %v778_v61 = vshrl.u32 %v777_v58, 23  ;;  %v587_v41 = vsel %vm466_vm1, %v586_v30, %v585_v28  ;;  %v658_v55 = vsel %vm652_vm14, %v1635_v17, %v657_v54 }
  0xfe   : > { %v711_v2 = vadd.s32 %v710_v60, %v701_v11  ;;  %vm714_vm10 = vc.u32 %v1674_v29, %v1686_v26  ;;  %v461_v62 = vsel %vm459_vm9, %v460_v34, %v451_v37  ;;  %v590_v27 = vsel %vm1658_vm3, %v1395_v15, %v587_v41 }
  0xff   : > { %v458_v49 = vsel %vm456_vm5, %v443_v47, %v457_v45  ;;  %v1081_v5 = vadd.s32 4294967169, %v778_v61  ;;  %vm452_vm11 = vweird.f32 %v1393_v14  ;;  %v592_v6 = vmul.f32 %v590_v27, %v590_v27 }
 0x100   : > { %v462_v42 = vsel %vm455_vm7, %v458_v49, %v461_v62  ;;  %v715_v17 = vadd.s32 1, %v711_v2  ;;  %v608_v40 = vadd.s32 3, %v591_v48  ;;  %v712_v16 = vmul.u32 %v1590_v39, %v658_v55 }
 0x101   : > { %v463_v31 = vsel %vm452_vm11, nan, %v462_v42  ;;  %v784_v3 = vadd.s32 1, %v1081_v5  ;;  %v593_v19 = vmul.f32 -0.001358992, %v592_v6  ;;  %v600_v7 = vmul.f32 -0.00019511016, %v592_v6 }
 0x102   : > { %929 = vst [vmem:[%s1707_s5] sm:$0xff] %v463_v31  ;;  %v716_v14 = vsel %vm714_vm10, %v715_v17, %v711_v2  ;;  %v774_v4 = vand.u32 2147483647, %v1629_v63  ;;  %v609_v18 = vand.u32 3, %v608_v40  ;;  %vm607_vm14 = vweird.f32 %v1395_v15 }
 0x103   : > { %v717_v43 = vadd.s32 %v716_v14, %v712_v16  ;;  %vm785_vm12 = vcmp.gt.s32.totalorder %v784_v3, 0  ;;  %v594_v35 = vadd.f32 0.041655596, %v593_v19  ;;  %v601_v25 = vadd.f32 0.008332121, %v600_v7 }
 0x104   : > { %v786_v8 = vsel %vm785_vm12, %v784_v3, 0  ;;  %v781_v12 = vand.u32 8388607, %v774_v4  ;;  %vm610_vm13 = vcmp.lt.s32.totalorder %v609_v18, 2  ;;  %vm611_vm0 = vcmp.eq.s32.totalorder %v609_v18, 0 }
 0x105   : > { %v718_v1 = vadd.s32 536870912, %v717_v43  ;;  %v788_v39 = vand.u32 31, %v786_v8  ;;  %v595_v9 = vmul.f32 %v594_v35, %v592_v6  ;;  %v602_v10 = vmul.f32 %v601_v25, %v592_v6 }
 0x106   : > { %v782_v36 = vor.u32 8388608, %v781_v12  ;;  %v1722_v24 = vshrl.u32 %v786_v8, 5  ;;  %vm614_vm1 = vcmp.eq.s32.totalorder %v609_v18, 2  ;;  %v713_v3 = vadd.s32 %v1686_v26, %v1674_v29 }
 0x107   : > { %v1716_v38 = vshrl.u32 %v718_v1, 30  ;;  %v1718_v13 = vsub.s32 32, %v788_v39  ;;  %v596_v22 = vadd.f32 -0.4999988, %v595_v9  ;;  %v603_v57 = vadd.f32 -0.16666654, %v602_v10 }
 0x108   : > { %v791_v34 = vshll.u32 %v1274_v44, %v788_v39  ;;  %v794_v30 = vshll.u32 %v1275_v46, %v788_v39  ;;  %v797_v48 = vshll.u32 %v1276_v50, %v788_v39  ;;  %v800_v61 = vshll.u32 %v1277_v53, %v788_v39 }
 0x109   : > { %v720_v32 = vshll.u32 %v1716_v38, 30  ;;  %v597_v20 = vmul.f32 %v596_v22, %v592_v6  ;;  %v604_v47 = vmul.f32 %v603_v57, %v592_v6  ;;  %v792_v28 = vshrl.u32 %v1275_v46, %v1718_v13 }
 0x10a   : > { %v795_v51 = vshrl.u32 %v1276_v50, %v1718_v13  ;;  %v801_v54 = vshrl.u32 %v1278_v56, %v1718_v13  ;;  %v798_v11 = vshrl.u32 %v1277_v53, %v1718_v13  ;;  %v804_v49 = vshrl.u32 %v1279_v59, %v1718_v13 }
 0x10b   : > { %v721_v23 = vsub.s32 %v717_v43, %v720_v32  ;;  %v598_v52 = vadd.f32 1.0, %v597_v20  ;;  %v605_v37 = vadd.f32 1.0, %v604_v47  ;;  %v1736_v55 = vor.u32 %v792_v28, %v791_v34 }
 0x10c   : > { %v1738_v2 = vor.u32 %v795_v51, %v794_v30  ;;  %v802_v5 = vor.u32 %v801_v54, %v800_v61  ;;  %v803_v50 = vshll.u32 %v1278_v56, %v788_v39  ;;  %v1745_v42 = vshll.u32 %v782_v36, 8 }
 0x10d   : > { %vm722_vm15 = vcmp.lt.s32.totalorder %v721_v23, 0  ;;  %v723_v58 = vsub.s32 0, %v721_v23  ;;  %v606_v60 = vmul.f32 %v605_v37, %v590_v27  ;;  %v615_v45 = vxor.u32 2147483648, %v598_v52 }
 0x10e   : > { %v1742_v27 = vor.u32 %v798_v11, %v797_v48  ;;  %vm806_vm2 = vcmp.lt.s32.totalorder %v1722_v24, 1  ;;  %v805_v59 = vor.u32 %v804_v49, %v803_v50  ;;  %vm809_vm3 = vcmp.lt.s32.totalorder %v1722_v24, 4 }
 0x10f   : > { %v724_v41 = vsel %vm722_vm15, %v723_v58, %v721_v23  ;;  %v612_v62 = vxor.u32 2147483648, %v606_v60  ;;  %v616_v6 = vsel %vm614_vm1, %v615_v45, %v606_v60  ;;  %v814_v40 = vsel %vm806_vm2, %v1736_v55, %v1738_v2 }
 0x110   : > { %v725_v46 = vclz %v724_v41  ;;  %vm808_vm5 = vcmp.lt.s32.totalorder %v1722_v24, 3  ;;  %v815_v16 = vsel %vm809_vm3, %v802_v5, 920167782  ;;  %vm807_vm6 = vcmp.lt.s32.totalorder %v1722_v24, 2 }
 0x111   : > { %v613_v53 = vsel %vm611_vm0, %v598_v52, %v612_v62  ;;  %v816_v7 = vsel %vm808_vm5, %v1742_v27, %v815_v16  ;;  %v818_v35 = vsel %vm806_vm2, %v1738_v2, %v1742_v27  ;;  %v819_v29 = vsel %vm809_vm3, %v805_v59, 1326507024 }
 0x112   : > { %v1079_v17 = vadd.s32 4294967294, %v725_v46  ;;  %v617_v31 = vsel %vm610_vm13, %v613_v53, %v616_v6  ;;  %v817_v43 = vsel %vm807_vm6, %v814_v40, %v816_v7  ;;  %v823_v26 = vand.u32 65535, %v1745_v42 }
 0x113   : > { %v618_v56 = vsel %vm607_vm14, nan, %v617_v31  ;;  %v847_v25 = vand.u32 65535, %v817_v43  ;;  %v848_v8 = vshrl.u32 %v817_v43, 16  ;;  %v820_v10 = vsel %vm808_vm5, %v802_v5, %v819_v29 }
 0x114   : > { %vm1080_vm4 = vcmp.lt.s32.totalorder %v1079_v17, 0  ;;  %930 = vst [vmem:[%s1707_s5 + $0x8] sm:$0xff] %v618_v56  ;;  %v821_v18 = vsel %vm807_vm6, %v818_v35, %v820_v10  ;;  %v824_v12 = vshrl.u32 %v1745_v42, 16  ;;  %vm1782_vm7 = vcmp.le.f32.partialorder %v619_v21, 0.7853982 }
 0x115   : > { %v728_v19 = vsel %vm1080_vm4, 0, %v1079_v17  ;;  %v850_v22 = vmul.u32 %v848_v8, %v823_v26  ;;  %v825_v20 = vand.u32 65535, %v821_v18  ;;  %v826_v47 = vshrl.u32 %v821_v18, 16 }
 0x116   : > { %v729_v14 = vsub.s32 32, %v728_v19  ;;  %v733_v15 = vsub.s32 4294967266, %v728_v19  ;;  %v730_v1 = vshll.u32 %v721_v23, %v728_v19  ;;  %v849_v36 = vmul.u32 %v847_v25, %v823_v26 }
 0x117   : > { %v851_v28 = vmul.u32 %v847_v25, %v824_v12  ;;  %v853_v51 = vshll.u32 %v850_v22, 16  ;;  %vm621_vm8 = vcmp.lt.s32.totalorder %v1407_v33, 0  ;;  %v828_v37 = vmul.u32 %v826_v47, %v823_v26 }
 0x118   : > { %v731_v39 = vshrl.u32 %v713_v3, %v729_v14  ;;  %v734_v9 = vadd.s32 127, %v733_v15  ;;  %v829_v54 = vmul.u32 %v825_v20, %v824_v12  ;;  %v852_v58 = vmul.u32 %v848_v8, %v824_v12 }
 0x119   : > { %vm857_vm9 = vc.u32 %v849_v36, %v853_v51  ;;  %v827_v11 = vmul.u32 %v825_v20, %v823_v26  ;;  %v831_v60 = vshll.u32 %v828_v37, 16  ;;  %v830_v48 = vmul.u32 %v826_v47, %v824_v12 }
 0x11a   : > { %v732_v57 = vor.u32 %v731_v39, %v730_v1  ;;  %v735_v32 = vshll.u32 %v734_v9, 23  ;;  %v858_v45 = vsel %vm857_vm9, 1, %v1273_v0  ;;  %v855_v61 = vshll.u32 %v851_v28, 16 }
 0x11b   : > { %v859_v41 = vadd.s32 %v853_v51, %v849_v36  ;;  %v860_v21 = vadd.s32 %v858_v45, %v852_v58  ;;  %v833_v62 = vshll.u32 %v829_v54, 16  ;;  %vm835_vm10 = vc.u32 %v827_v11, %v831_v60 }
 0x11c   : > { %v736_v52 = vor.u32 4788187, %v735_v32  ;;  %v739_v34 = vcvt.s32.f32 %v732_v57  ;;  %v837_v46 = vadd.s32 %v831_v60, %v827_v11  ;;  %v790_v5 = vshrl.u32 %v1274_v44, %v1718_v13 }
 0x11d   : > { %v811_v50 = vsel %vm809_vm3, %v1742_v27, 2102212464  ;;  %v836_v53 = vsel %vm835_vm10, 1, %v1273_v0  ;;  %vm861_vm11 = vc.u32 %v859_v41, %v855_v61  ;;  %v854_v56 = vshrl.u32 %v850_v22, 16 }
 0x11e   : > { %v737_v30 = vand.u32 2147483647, %v736_v52  ;;  %v838_v17 = vadd.s32 %v836_v53, %v830_v48  ;;  %vm839_vm12 = vc.u32 %v837_v46, %v833_v62  ;;  %v862_v31 = vsel %vm861_vm11, 1, %v1273_v0 }
 0x11f   : > { %v810_v59 = vsel %vm806_vm2, %v790_v5, %v1736_v55  ;;  %v840_v40 = vsel %vm839_vm12, 1, %v1273_v0  ;;  %v864_v44 = vadd.s32 %v862_v31, %v860_v21  ;;  %v812_v27 = vsel %vm808_vm5, %v1738_v2, %v811_v50 }
 0x120   : > { %v740_v49 = vmul.f32 %v739_v34, %v737_v30  ;;  %v832_v16 = vshrl.u32 %v828_v37, 16  ;;  %v842_v3 = vadd.s32 %v840_v40, %v838_v17  ;;  %v743_v19 = vsub.s32 4, %v1716_v38 }
 0x121   : > { %v856_v55 = vshrl.u32 %v851_v28, 16  ;;  %v865_v14 = vadd.s32 %v864_v44, %v854_v56  ;;  %v834_v15 = vshrl.u32 %v829_v54, 16  ;;  %v813_v35 = vsel %vm807_vm6, %v810_v59, %v812_v27 }
 0x122   : > { %v741_v6 = vxor.u32 2147483648, %v740_v49  ;;  %v843_v43 = vadd.s32 %v842_v3, %v832_v16  ;;  %v863_v8 = vadd.s32 %v859_v41, %v855_v61  ;;  %v744_v1 = vsel %vm621_vm8, %v743_v19, %v1716_v38 }
 0x123   : > { %v866_v29 = vadd.s32 %v865_v14, %v856_v55  ;;  %v867_v18 = vmul.u32 %v1745_v42, %v813_v35  ;;  %v746_v24 = vsel %vm1782_vm7, 0, %v744_v1  ;;  %vm762_vm2 = vweird.f32 %v1407_v33 }
 0x124   : > { %v742_v13 = vsel %vm621_vm8, %v741_v6, %v740_v49  ;;  %v844_v2 = vadd.s32 %v843_v43, %v834_v15  ;;  %v763_v28 = vadd.s32 3, %v746_v24  ;;  %vm776_vm4 = vcmp.lt.s32.totalorder %v1629_v63, 0 }
 0x125   : > { %v745_v7 = vsel %vm1782_vm7, %v1407_v33, %v742_v13  ;;  %v870_v39 = vadd.s32 1, %v866_v29  ;;  %vm1821_vm5 = vcmp.le.f32.partialorder %v774_v4, 0.7853982  ;;  %vm917_vm9 = vweird.f32 %v1629_v63 }
 0x126   : > { %v747_v0 = vmul.f32 %v745_v7, %v745_v7  ;;  %vm869_vm13 = vc.u32 %v844_v2, %v863_v8  ;;  %v764_v58 = vand.u32 3, %v763_v28  ;;  %v868_v5 = vadd.s32 %v863_v8, %v844_v2 }
 0x127   : > { %v871_v12 = vsel %vm869_vm13, %v870_v39, %v866_v29 }
 0x128   : > { %v748_v26 = vmul.f32 -0.001358992, %v747_v0  ;;  %v755_v25 = vmul.f32 -0.00019511016, %v747_v0  ;;  %v872_v32 = vadd.s32 %v871_v12, %v867_v18  ;;  %vm766_vm15 = vcmp.eq.s32.totalorder %v764_v58, 0 }
 0x129   : > { %vm769_vm0 = vcmp.eq.s32.totalorder %v764_v58, 2  ;;  %vm765_vm1 = vcmp.lt.s32.totalorder %v764_v58, 2 }
 0x12a   : > { %v749_v9 = vadd.f32 0.041655596, %v748_v26  ;;  %v756_v10 = vadd.f32 0.008332121, %v755_v25  ;;  %v873_v36 = vadd.s32 536870912, %v872_v32 }
 0x12c   : > { %v750_v22 = vmul.f32 %v749_v9, %v747_v0  ;;  %v757_v57 = vmul.f32 %v756_v10, %v747_v0  ;;  %v874_v38 = vshrl.u32 %v873_v36, 30 }
 0x12e   : > { %v751_v20 = vadd.f32 -0.4999988, %v750_v22  ;;  %v758_v47 = vadd.f32 -0.16666654, %v757_v57  ;;  %v875_v54 = vshll.u32 %v874_v38, 30  ;;  %v898_v19 = vsub.s32 4, %v874_v38 }
 0x130   : > { %v752_v51 = vmul.f32 %v751_v20, %v747_v0  ;;  %v759_v52 = vmul.f32 %v758_v47, %v747_v0  ;;  %v876_v11 = vsub.s32 %v872_v32, %v875_v54  ;;  %v899_v15 = vsel %vm776_vm4, %v898_v19, %v874_v38 }
 0x131   : > { %v901_v29 = vsel %vm1821_vm5, 0, %v899_v15 }
 0x132   : > { %v753_v37 = vadd.f32 1.0, %v752_v51  ;;  %v760_v34 = vadd.f32 1.0, %v759_v52  ;;  %vm877_vm14 = vcmp.lt.s32.totalorder %v876_v11, 0  ;;  %v878_v60 = vsub.s32 0, %v876_v11 }
 0x133   : > { %v918_v8 = vadd.s32 3, %v901_v29 }
 0x134   : > { %v761_v42 = vmul.f32 %v760_v34, %v745_v7  ;;  %v770_v30 = vxor.u32 2147483648, %v753_v37  ;;  %v879_v61 = vsel %vm877_vm14, %v878_v60, %v876_v11 }
 0x135   : > { %v880_v21 = vclz %v879_v61  ;;  %v919_v18 = vand.u32 3, %v918_v8 }
 0x136   : > { %v767_v23 = vxor.u32 2147483648, %v761_v42  ;;  %v771_v48 = vsel %vm769_vm0, %v770_v30, %v761_v42 }
 0x137   : > { %v1082_v62 = vadd.s32 4294967294, %v880_v21  ;;  %vm921_vm6 = vcmp.eq.s32.totalorder %v919_v18, 0  ;;  %vm924_vm7 = vcmp.eq.s32.totalorder %v919_v18, 2  ;;  %vm920_vm8 = vcmp.lt.s32.totalorder %v919_v18, 2 }
 0x138   : > { %v768_v45 = vsel %vm766_vm15, %v753_v37, %v767_v23 }
 0x139   : > { %v772_v41 = vsel %vm765_vm1, %v768_v45, %v771_v48  ;;  %vm1083_vm3 = vcmp.lt.s32.totalorder %v1082_v62, 0 }
 0x13a   : > { %v773_v49 = vsel %vm762_vm2, nan, %v772_v41  ;;  %v883_v46 = vsel %vm1083_vm3, 0, %v1082_v62 }
 0x13b   : > { %931 = vst [vmem:[%s1707_s5 + $0x10] sm:$0xff] %v773_v49  ;;  %v884_v50 = vsub.s32 32, %v883_v46  ;;  %v888_v53 = vsub.s32 4294967266, %v883_v46  ;;  %v885_v6 = vshll.u32 %v876_v11, %v883_v46 }
 0x13d   : > { %v886_v17 = vshrl.u32 %v868_v5, %v884_v50  ;;  %v889_v31 = vadd.s32 127, %v888_v53 }
 0x13f   : > { %v887_v59 = vor.u32 %v886_v17, %v885_v6  ;;  %v890_v40 = vshll.u32 %v889_v31, 23 }
 0x141   : > { %v891_v56 = vor.u32 4788187, %v890_v40  ;;  %v894_v13 = vcvt.s32.f32 %v887_v59 }
 0x143   : > { %v892_v44 = vand.u32 2147483647, %v891_v56 }
 0x145   : > { %v895_v33 = vmul.f32 %v894_v13, %v892_v44 }
 0x147   : > { %v896_v27 = vxor.u32 2147483648, %v895_v33 }
 0x149   : > { %v897_v3 = vsel %vm776_vm4, %v896_v27, %v895_v33 }
 0x14a   : > { %v900_v7 = vsel %vm1821_vm5, %v1629_v63, %v897_v3 }
 0x14b   : > { %v902_v55 = vmul.f32 %v900_v7, %v900_v7 }
 0x14d   : > { %v903_v14 = vmul.f32 -0.001358992, %v902_v55  ;;  %v910_v0 = vmul.f32 -0.00019511016, %v902_v55 }
 0x14f   : > { %v904_v43 = vadd.f32 0.041655596, %v903_v14  ;;  %v911_v35 = vadd.f32 0.008332121, %v910_v0 }
 0x151   : > { %v905_v4 = vmul.f32 %v904_v43, %v902_v55  ;;  %v912_v26 = vmul.f32 %v911_v35, %v902_v55 }
 0x153   : > { %v906_v25 = vadd.f32 -0.4999988, %v905_v4  ;;  %v913_v2 = vadd.f32 -0.16666654, %v912_v26 }
 0x155   : > { %v907_v1 = vmul.f32 %v906_v25, %v902_v55  ;;  %v914_v39 = vmul.f32 %v913_v2, %v902_v55 }
 0x157   : > { %v908_v9 = vadd.f32 1.0, %v907_v1  ;;  %v915_v10 = vadd.f32 1.0, %v914_v39 }
 0x159   : > { %v916_v12 = vmul.f32 %v915_v10, %v900_v7  ;;  %v925_v24 = vxor.u32 2147483648, %v908_v9 }
 0x15b   : > { %v922_v22 = vxor.u32 2147483648, %v916_v12  ;;  %v926_v32 = vsel %vm924_vm7, %v925_v24, %v916_v12 }
 0x15d   : > { %v923_v57 = vsel %vm921_vm6, %v908_v9, %v922_v22 }
 0x15e   : > { %v927_v20 = vsel %vm920_vm8, %v923_v57, %v926_v32 }
 0x15f   : > { %v928_v47 = vsel %vm917_vm9, nan, %v927_v20 }
 0x160   : > { %932 = vst [vmem:[%s1707_s5 + $0x18] sm:$0xff] %v928_v47 }
 0x161   : > { %1204 = shalt.err (!%p1201_p7)
}
 0x162   : > { %s1280_s23 = smov 128   ;;  %s1281_s5 = smov 256  }
 0x163   : > { %s1282_s7 = smov 8  }
 0x164   : > { %1094 = dma.vmem_to_hbm [thread:$0]  (%p1354_p3), %s1836_s11, 512, %s950_s20, %s934_s15, %s1280_s23, %s1281_s5, %s1282_s7  }
 0x165 PF: > { %p1100_p9 = scmp.ge.s32.totalorder %s1271_s19, 2  ;;  %s964_s8 = sand.u32 1, %s1243_s12  }
 0x166   : > { %s965_s9 = scalar_lea.sflag [#allocation3], %s964_s8 }
 0x167   : > { %p1097_p10 = pnand %p1100_p9, %p1363_p8 }
 0x169   : > { %p1098_p11 = pneg %p1097_p10 }
 0x16b   : > { %1238 = dma.done.wait (%p1098_p11), %s965_s9, 512  }
 0x16c   : > { %1240 = vsyncadd (%p1098_p11), %s965_s9, 4294966784  ;;  %s16_s19 = sadd.s32 1, %s1271_s19   ;;  %s1897_s25 = sld [smem:[#allocation5_spill]] }
 0x16d   : > { %p13_p12 = scmp.ge.s32.totalorder %s16_s19, 6   ;;  %s1898_s12 = smov %s1247_s13 }
 0x16e   : > { %s1899_s13 = smov %s1251_s14  ;;  %s1900_s14 = smov %s1372_s30 }
 0x16f   : > { %s1901_s15 = smov %s1263_s17  ;;  %s1902_s16 = smov %s1267_s18 }
 0x170   : > { %s1903_s17 = smov %s1906_s22  ;;  %15 = sbr.rel (!%p13_p12) target bundleno = 5 (0x5), region = 73 }
 0x172   : > { %s1904_s18 = smov %s1897_s25 }
 0x175   :  { %971 = vsyncpa [#allocation3], 1 }
 0x176   :  { %973 = vsyncpa [#allocation3 + $0x1], 1 }

</bundles_post_ra>
